<compile_context>
chip_gen: v7x
topology: tpu7x:2x2x1
jax: 0.10.0
libtpu: 0.0.40
codegen_flags: <defaults>
</compile_context>

<pallas_src>
import functools

import jax
import jax.numpy as jnp
from jax.experimental import pallas as pl
from jax.experimental.pallas import tpu as pltpu

_LANE = 128


def cassi_kernel(x_ref, m_ref, o_ref, *, channels):
    """One (1, C, rows, 128) tile: x0_c = (sum_c x_c * m_c) * m_c.

    Per-channel plane loop on the VPU.  Each bf16 mask plane is (re)loaded
    and upcast right where it is used, keeping only ~3 (rows, 128) f32
    planes live at a time (no vreg/VMEM spills even at C=28).
    """
    # encode_CASSI: channel reduction as a plane-wise VPU accumulation.
    acc = x_ref[0, 0] * m_ref[0, 0].astype(jnp.float32)
    for c in range(1, channels):
        acc = acc + x_ref[0, c] * m_ref[0, c].astype(jnp.float32)

    # init_CASSI: broadcast the measurement back over channels and re-mask.
    # Re-reading the bf16 mask plane from VMEM is free under HBM-bound slack.
    for c in range(channels):
        o_ref[0, c] = acc * m_ref[0, c].astype(jnp.float32)


def _vmem_capacity_bytes():
    try:
        return int(pltpu.get_tpu_info().vmem_capacity_bytes)
    except Exception:
        return 64 * 1024 * 1024  # conservative (v7x per-TensorCore physical)


def _pick_spatial_tile(S, C):
    """Pick (rows_tile, r_pad, vmem_limit) for the flattened spatial axis.

    Spatial is viewed as (r, 128).  Per row of one block the VMEM footprint is
      x f32 x2 buffers (8 B/elem) + out f32 x2 (8 B) + mask bf16 x2 (4 B)
      = 20 * C * 128 bytes.
    Budget is generation-aware: big tiles on 128-MiB-VMEM parts (v5e/v6e),
    conservative on v7x (64 MiB physical / 32 MiB scoped per TensorCore).
    """
    r = -(-S // _LANE)  # cdiv
    if _vmem_capacity_bytes() >= 100 * 1024 * 1024:   # v5e / v6e: 128 MiB VMEM
        tile_budget = 48 * 1024 * 1024
        vmem_limit = 96 * 1024 * 1024
    else:                                             # v7x or unknown
        tile_budget = 20 * 1024 * 1024
        vmem_limit = 32 * 1024 * 1024
    per_row = 20 * C * _LANE
    rows_max = max(tile_budget // per_row, 1)
    if r <= rows_max:
        # Whole spatial extent fits in one block (block dim == full dim, so
        # no sublane-multiple constraint applies).
        return r, r, vmem_limit
    # Tiled case: the bf16 mask's (16, 128) tiling wants the sublane dim to
    # be a multiple of 16.  With the budgets above rows_max >= 16 for any
    # realistic C, so this floor never pushes the tile past the budget.
    rows_tile = max((rows_max // 16) * 16, 16)
    r_pad = -(-r // rows_tile) * rows_tile
    return rows_tile, r_pad, vmem_limit


def coded_net_forward(x, mask_single):
    """CASSI encode + init, channel-major layout (no wrapper transposes).

    Args:
      x:           [B, C, H, W] float32.
      mask_single: [C, H, W] float32 binary mask shared across the batch
                   (the PyTorch module tiles one random frame over the batch).

    Returns:
      x0:   [B, C, H, W] float32, x0_c = (sum_c x_c * m_c) * m_c.
      mask: [C, H, W] float32 — the single shared frame.  The PyTorch module
            returns it broadcast to [B, ...]; broadcasting is left to the
            caller so we never write B identical copies to HBM.
    """
    B, C, H, W = x.shape
    S = H * W

    rows_tile, r_pad, vmem_limit = _pick_spatial_tile(S, C)
    s_pad = r_pad * _LANE

    # Free, layout-preserving reshapes (channel-major stays channel-major).
    x_flat = x.reshape(B, C, S)
    m_flat = mask_single.reshape(1, C, S).astype(jnp.bfloat16)  # 0/1 exact
    if s_pad != S:
        # One-time pad copy so the flattened spatial axis tiles evenly.
        # TODO(synk): ragged last block (pl.cdiv grid + masked edge) would
        # avoid this copy entirely.
        pad = s_pad - S
        x_flat = jnp.pad(x_flat, ((0, 0), (0, 0), (0, pad)))
        m_flat = jnp.pad(m_flat, ((0, 0), (0, 0), (0, pad)))
    x4 = x_flat.reshape(B, C, r_pad, _LANE)
    m4 = m_flat.reshape(1, C, r_pad, _LANE)

    n_tiles = r_pad // rows_tile
    block = (1, C, rows_tile, _LANE)

    # Grid order (spatial tile, batch): batch is innermost, so the mask block
    # index is unchanged across consecutive steps and its tile stays resident
    # in VMEM for the whole batch (mask HBM traffic ~ once per spatial tile).
    # Both axes "parallel" -> n_tiles*B blocks available to v7x's two cores.
    # NOTE: the mask is still double-buffered by default; pl.Buffered(1)
    # would shave ~10% of the per-step VMEM but is skipped for lowering
    # compatibility safety (already accounted for in the budget math).
    x0_4 = pl.pallas_call(
        functools.partial(cassi_kernel, channels=C),
        out_shape=jax.ShapeDtypeStruct((B, C, r_pad, _LANE), jnp.float32),
        grid_spec=pltpu.PrefetchScalarGridSpec(
            num_scalar_prefetch=0,
            grid=(n_tiles, B),
            in_specs=[
                pl.BlockSpec(block, lambda t, b: (b, 0, t, 0)),  # x: streams
                pl.BlockSpec(block, lambda t, b: (0, 0, t, 0)),  # mask: resident
            ],
            out_specs=pl.BlockSpec(block, lambda t, b: (b, 0, t, 0)),
        ),
        compiler_params=pltpu.CompilerParams(
            dimension_semantics=("parallel", "parallel"),
            vmem_limit_bytes=vmem_limit,
        ),
    )(x4, m4)

    if s_pad != S:
        x0 = x0_4.reshape(B, C, s_pad)[:, :, :S].reshape(B, C, H, W)
    else:
        x0 = x0_4.reshape(B, C, H, W)
    return x0, mask_single


def coded_net_forward_nhwc(x_nhwc, mask_nhwc):
    """Drop-in layout parity with the PyTorch module ([B,H,W,C] in/out).

    NOTE: each transpose here is a full extra HBM read+write of x / x0;
    prefer keeping data channel-major end-to-end via coded_net_forward.
    """
    x_cm = jnp.transpose(x_nhwc, (0, 3, 1, 2))
    m_cm = jnp.transpose(mask_nhwc, (2, 0, 1))
    x0_cm, m_out = coded_net_forward(x_cm, m_cm)
    return jnp.transpose(x0_cm, (0, 2, 3, 1)), jnp.transpose(m_out, (1, 2, 0))


def ran_cu(key, block_size, channel):
    """Deterministic JAX re-implementation of CodedNet.ran_Cu (single frame).

    Returns the channel-major per-frame mask [channel, block, block]; batch
    tiling is a (lazy) broadcast left to the caller.
    """
    half = block_size // 2
    t = jnp.round(jax.random.uniform(key, (half, half), dtype=jnp.float32))
    t = jnp.concatenate([t, t], axis=0)
    t = jnp.concatenate([t, t], axis=1)                     # (block, block)
    cu = jnp.stack(
        [jnp.roll(t, shift=-ch, axis=0) for ch in range(channel)], axis=0
    )                                                       # (C, block, block)
    return cu.astype(jnp.float32)


if __name__ == "__main__":
    # Small shapes consistent with the module: batch=2, block_size=16, channel=4.
    B, BS, C = 2, 16, 4
    key = jax.random.PRNGKey(0)
    kx, kmask = jax.random.split(key)

    mask_cm = ran_cu(kmask, BS, C)                          # [C, BS, BS]
    x_cm = jax.random.normal(kx, (B, C, BS, BS), dtype=jnp.float32)

    x0, m_out = jax.jit(coded_net_forward)(x_cm, mask_cm)
    jax.block_until_ready((x0, m_out))

    # Channel-major reference (same math as encode_CASSI + init_CASSI).
    y_ref = jnp.sum(x_cm * mask_cm[None], axis=1)
    x0_ref = y_ref[:, None, :, :] * mask_cm[None]
    assert x0.shape == (B, C, BS, BS)
    assert jnp.allclose(x0, x0_ref, atol=1e-5, rtol=1e-5)
    assert jnp.allclose(m_out, mask_cm)

    # NHWC drop-in wrapper: exact PyTorch-layout semantics.
    x_nhwc = jnp.transpose(x_cm, (0, 2, 3, 1))
    mask_nhwc = jnp.transpose(mask_cm, (1, 2, 0))
    x0_nhwc, m_nhwc = jax.jit(coded_net_forward_nhwc)(x_nhwc, mask_nhwc)
    jax.block_until_ready((x0_nhwc, m_nhwc))
    cu_ref = jnp.broadcast_to(mask_nhwc[None], (B, BS, BS, C))
    y2_ref = jnp.sum(x_nhwc * cu_ref, axis=3)
    x0_nhwc_ref = y2_ref[..., None] * cu_ref
    assert jnp.allclose(x0_nhwc, x0_nhwc_ref, atol=1e-5, rtol=1e-5)

    print("KERNEL_OK")
</pallas_src>

<mosaic_0001>
module attributes {stable_mosaic.version = 11 : i64} {
  func.func @cassi_kernel(%arg0: i32, %arg1: i32, %arg2: memref<1x4x2x128xf32, #tpu.memory_space<vmem>>, %arg3: memref<1x4x2x128xbf16, #tpu.memory_space<vmem>>, %arg4: memref<1x4x2x128xf32, #tpu.memory_space<vmem>>) attributes {dimension_semantics = [#tpu.dimension_semantics<parallel>, #tpu.dimension_semantics<parallel>], iteration_bounds = array<i64: 1, 2>, scalar_prefetch = 0 : i64, scratch_operands = 0 : i64, tpu.core_type = #tpu.core_type<tc>, window_params = [{transform_indices = @transform_0, window_bounds = array<i64: 1, 4, 2, 128>}, {transform_indices = @transform_1, window_bounds = array<i64: 1, 4, 2, 128>}, {transform_indices = @transform_2, window_bounds = array<i64: 1, 4, 2, 128>}]} {
    %c0 = arith.constant 0 : index
    %c0_0 = arith.constant 0 : index
    %c0_1 = arith.constant 0 : index
    %c0_2 = arith.constant 0 : index
    %0 = vector.load %arg2[%c0, %c0_0, %c0_1, %c0_2] : memref<1x4x2x128xf32, #tpu.memory_space<vmem>>, vector<1x1x2x128xf32>
    %1 = vector.shape_cast %0 : vector<1x1x2x128xf32> to vector<2x128xf32>
    %c0_3 = arith.constant 0 : index
    %c0_4 = arith.constant 0 : index
    %c0_5 = arith.constant 0 : index
    %c0_6 = arith.constant 0 : index
    %2 = vector.load %arg3[%c0_3, %c0_4, %c0_5, %c0_6] : memref<1x4x2x128xbf16, #tpu.memory_space<vmem>>, vector<1x1x2x128xbf16>
    %3 = vector.shape_cast %2 : vector<1x1x2x128xbf16> to vector<2x128xbf16>
    %4 = arith.extf %3 : vector<2x128xbf16> to vector<2x128xf32>
    %5 = arith.mulf %1, %4 : vector<2x128xf32>
    %c0_7 = arith.constant 0 : index
    %c1 = arith.constant 1 : index
    %c0_8 = arith.constant 0 : index
    %c0_9 = arith.constant 0 : index
    %6 = vector.load %arg2[%c0_7, %c1, %c0_8, %c0_9] : memref<1x4x2x128xf32, #tpu.memory_space<vmem>>, vector<1x1x2x128xf32>
    %7 = vector.shape_cast %6 : vector<1x1x2x128xf32> to vector<2x128xf32>
    %c0_10 = arith.constant 0 : index
    %c1_11 = arith.constant 1 : index
    %c0_12 = arith.constant 0 : index
    %c0_13 = arith.constant 0 : index
    %8 = vector.load %arg3[%c0_10, %c1_11, %c0_12, %c0_13] : memref<1x4x2x128xbf16, #tpu.memory_space<vmem>>, vector<1x1x2x128xbf16>
    %9 = vector.shape_cast %8 : vector<1x1x2x128xbf16> to vector<2x128xbf16>
    %10 = arith.extf %9 : vector<2x128xbf16> to vector<2x128xf32>
    %11 = arith.mulf %7, %10 : vector<2x128xf32>
    %12 = arith.addf %5, %11 : vector<2x128xf32>
    %c0_14 = arith.constant 0 : index
    %c2 = arith.constant 2 : index
    %c0_15 = arith.constant 0 : index
    %c0_16 = arith.constant 0 : index
    %13 = vector.load %arg2[%c0_14, %c2, %c0_15, %c0_16] : memref<1x4x2x128xf32, #tpu.memory_space<vmem>>, vector<1x1x2x128xf32>
    %14 = vector.shape_cast %13 : vector<1x1x2x128xf32> to vector<2x128xf32>
    %c0_17 = arith.constant 0 : index
    %c2_18 = arith.constant 2 : index
    %c0_19 = arith.constant 0 : index
    %c0_20 = arith.constant 0 : index
    %15 = vector.load %arg3[%c0_17, %c2_18, %c0_19, %c0_20] : memref<1x4x2x128xbf16, #tpu.memory_space<vmem>>, vector<1x1x2x128xbf16>
    %16 = vector.shape_cast %15 : vector<1x1x2x128xbf16> to vector<2x128xbf16>
    %17 = arith.extf %16 : vector<2x128xbf16> to vector<2x128xf32>
    %18 = arith.mulf %14, %17 : vector<2x128xf32>
    %19 = arith.addf %12, %18 : vector<2x128xf32>
    %c0_21 = arith.constant 0 : index
    %c3 = arith.constant 3 : index
    %c0_22 = arith.constant 0 : index
    %c0_23 = arith.constant 0 : index
    %20 = vector.load %arg2[%c0_21, %c3, %c0_22, %c0_23] : memref<1x4x2x128xf32, #tpu.memory_space<vmem>>, vector<1x1x2x128xf32>
    %21 = vector.shape_cast %20 : vector<1x1x2x128xf32> to vector<2x128xf32>
    %c0_24 = arith.constant 0 : index
    %c3_25 = arith.constant 3 : index
    %c0_26 = arith.constant 0 : index
    %c0_27 = arith.constant 0 : index
    %22 = vector.load %arg3[%c0_24, %c3_25, %c0_26, %c0_27] : memref<1x4x2x128xbf16, #tpu.memory_space<vmem>>, vector<1x1x2x128xbf16>
    %23 = vector.shape_cast %22 : vector<1x1x2x128xbf16> to vector<2x128xbf16>
    %24 = arith.extf %23 : vector<2x128xbf16> to vector<2x128xf32>
    %25 = arith.mulf %21, %24 : vector<2x128xf32>
    %26 = arith.addf %19, %25 : vector<2x128xf32>
    %c0_28 = arith.constant 0 : index
    %c0_29 = arith.constant 0 : index
    %c0_30 = arith.constant 0 : index
    %c0_31 = arith.constant 0 : index
    %27 = vector.load %arg3[%c0_28, %c0_29, %c0_30, %c0_31] : memref<1x4x2x128xbf16, #tpu.memory_space<vmem>>, vector<1x1x2x128xbf16>
    %28 = vector.shape_cast %27 : vector<1x1x2x128xbf16> to vector<2x128xbf16>
    %29 = arith.extf %28 : vector<2x128xbf16> to vector<2x128xf32>
    %30 = arith.mulf %26, %29 : vector<2x128xf32>
    %c0_32 = arith.constant 0 : index
    %c0_33 = arith.constant 0 : index
    %c0_34 = arith.constant 0 : index
    %c0_35 = arith.constant 0 : index
    %31 = vector.load %arg4[%c0_32, %c0_33, %c0_34, %c0_35] : memref<1x4x2x128xf32, #tpu.memory_space<vmem>>, vector<1x1x2x128xf32>
    %32 = vector.shape_cast %31 : vector<1x1x2x128xf32> to vector<2x128xf32>
    %33 = vector.shape_cast %30 : vector<2x128xf32> to vector<1x1x2x128xf32>
    tpu.vector_store %arg4[%c0_32, %c0_33, %c0_34, %c0_35], %33 {strides = array<i32>} : memref<1x4x2x128xf32, #tpu.memory_space<vmem>>, vector<1x1x2x128xf32>,
    %c0_36 = arith.constant 0 : index
    %c1_37 = arith.constant 1 : index
    %c0_38 = arith.constant 0 : index
    %c0_39 = arith.constant 0 : index
    %34 = vector.load %arg3[%c0_36, %c1_37, %c0_38, %c0_39] : memref<1x4x2x128xbf16, #tpu.memory_space<vmem>>, vector<1x1x2x128xbf16>
    %35 = vector.shape_cast %34 : vector<1x1x2x128xbf16> to vector<2x128xbf16>
    %36 = arith.extf %35 : vector<2x128xbf16> to vector<2x128xf32>
    %37 = arith.mulf %26, %36 : vector<2x128xf32>
    %c0_40 = arith.constant 0 : index
    %c1_41 = arith.constant 1 : index
    %c0_42 = arith.constant 0 : index
    %c0_43 = arith.constant 0 : index
    %38 = vector.load %arg4[%c0_40, %c1_41, %c0_42, %c0_43] : memref<1x4x2x128xf32, #tpu.memory_space<vmem>>, vector<1x1x2x128xf32>
    %39 = vector.shape_cast %38 : vector<1x1x2x128xf32> to vector<2x128xf32>
    %40 = vector.shape_cast %37 : vector<2x128xf32> to vector<1x1x2x128xf32>
    tpu.vector_store %arg4[%c0_40, %c1_41, %c0_42, %c0_43], %40 {strides = array<i32>} : memref<1x4x2x128xf32, #tpu.memory_space<vmem>>, vector<1x1x2x128xf32>,
    %c0_44 = arith.constant 0 : index
    %c2_45 = arith.constant 2 : index
    %c0_46 = arith.constant 0 : index
    %c0_47 = arith.constant 0 : index
    %41 = vector.load %arg3[%c0_44, %c2_45, %c0_46, %c0_47] : memref<1x4x2x128xbf16, #tpu.memory_space<vmem>>, vector<1x1x2x128xbf16>
    %42 = vector.shape_cast %41 : vector<1x1x2x128xbf16> to vector<2x128xbf16>
    %43 = arith.extf %42 : vector<2x128xbf16> to vector<2x128xf32>
    %44 = arith.mulf %26, %43 : vector<2x128xf32>
    %c0_48 = arith.constant 0 : index
    %c2_49 = arith.constant 2 : index
    %c0_50 = arith.constant 0 : index
    %c0_51 = arith.constant 0 : index
    %45 = vector.load %arg4[%c0_48, %c2_49, %c0_50, %c0_51] : memref<1x4x2x128xf32, #tpu.memory_space<vmem>>, vector<1x1x2x128xf32>
    %46 = vector.shape_cast %45 : vector<1x1x2x128xf32> to vector<2x128xf32>
    %47 = vector.shape_cast %44 : vector<2x128xf32> to vector<1x1x2x128xf32>
    tpu.vector_store %arg4[%c0_48, %c2_49, %c0_50, %c0_51], %47 {strides = array<i32>} : memref<1x4x2x128xf32, #tpu.memory_space<vmem>>, vector<1x1x2x128xf32>,
    %c0_52 = arith.constant 0 : index
    %c3_53 = arith.constant 3 : index
    %c0_54 = arith.constant 0 : index
    %c0_55 = arith.constant 0 : index
    %48 = vector.load %arg3[%c0_52, %c3_53, %c0_54, %c0_55] : memref<1x4x2x128xbf16, #tpu.memory_space<vmem>>, vector<1x1x2x128xbf16>
    %49 = vector.shape_cast %48 : vector<1x1x2x128xbf16> to vector<2x128xbf16>
    %50 = arith.extf %49 : vector<2x128xbf16> to vector<2x128xf32>
    %51 = arith.mulf %26, %50 : vector<2x128xf32>
    %c0_56 = arith.constant 0 : index
    %c3_57 = arith.constant 3 : index
    %c0_58 = arith.constant 0 : index
    %c0_59 = arith.constant 0 : index
    %52 = vector.load %arg4[%c0_56, %c3_57, %c0_58, %c0_59] : memref<1x4x2x128xf32, #tpu.memory_space<vmem>>, vector<1x1x2x128xf32>
    %53 = vector.shape_cast %52 : vector<1x1x2x128xf32> to vector<2x128xf32>
    %54 = vector.shape_cast %51 : vector<2x128xf32> to vector<1x1x2x128xf32>
    tpu.vector_store %arg4[%c0_56, %c3_57, %c0_58, %c0_59], %54 {strides = array<i32>} : memref<1x4x2x128xf32, #tpu.memory_space<vmem>>, vector<1x1x2x128xf32>,
    return
  }
  func.func @transform_0(%arg0: i32, %arg1: i32) -> (i32, i32, i32, i32) {
    %c0_i32 = arith.constant 0 : i32
    %c0_i32_0 = arith.constant 0 : i32
    %c0_i32_1 = arith.constant 0 : i32
    return %arg1, %c0_i32, %arg0, %c0_i32_0 : i32, i32, i32, i32
  }
  func.func @transform_1(%arg0: i32, %arg1: i32) -> (i32, i32, i32, i32) {
    %c0_i32 = arith.constant 0 : i32
    %c0_i32_0 = arith.constant 0 : i32
    %c0_i32_1 = arith.constant 0 : i32
    %c0_i32_2 = arith.constant 0 : i32
    return %c0_i32, %c0_i32_0, %arg0, %c0_i32_1 : i32, i32, i32, i32
  }
  func.func @transform_2(%arg0: i32, %arg1: i32) -> (i32, i32, i32, i32) {
    %c0_i32 = arith.constant 0 : i32
    %c0_i32_0 = arith.constant 0 : i32
    %c0_i32_1 = arith.constant 0 : i32
    return %arg1, %c0_i32, %arg0, %c0_i32_0 : i32, i32, i32, i32
  }
}

</mosaic_0001>

<bundles_post_ra>
// kernel: coded_net_forward.1
= control target key start
LH: loop header
LB: loop body
LE: loop exit
PB: predicated region body
PF: predicated region fallthrough
CT: control target
= control target key end

     0   :  { %s416_s9 = smov 0   ;;  %s418_s10 = smov 0   ;;  %s470_s0 = inlined_call_operand.vmem [shape: f32[2,4,2,128], index: 0, kind: input, shape index: {}]   ;;  %s471_s1 = inlined_call_operand.vmem [shape: bf16[1,4,2,128], index: 1, kind: input, shape index: {}]   ;;  %s472_s2 = inlined_call_operand.vmem [shape: f32[2,4,2,128], index: 2, kind: output, shape index: {}]  }
   0x1   :  { %s420_s11 = smov 0  }
   0x2 LB: > { %s21_s12 = sadd.s32 1, %s395_s10  ;;  %p332_p0 = scmp.ge.s32.totalorder %s399_s11, 1  ;;  %s399_s11 = sphi %s420_s11, %s12_s11   ;;  %s395_s10 = sphi %s418_s10, %s474_s10   ;;  %s391_s9 = sphi %s416_s9, %s473_s9  }
   0x3   : > { %p22_p1 = scmp.ge.s32.totalorder %s21_s12, 2  ;;  %p139_p2 = scmp.lt.s32.totalorder %s399_s11, 3 }
   0x5   : > { %s476_s12 = smov (%p22_p1, %s21_s12), 0  ;;  %p140_p3 = pnand %p332_p0, %p139_p2 }
   0x6   : > { %p170_p4 = scmp.lt.s32.totalorder (!%p140_p3), %s391_s9, 1  ;;  %v190_v0 = vld [vmem:[%s471_s1] sm:$0x1] (!%p140_p3)  ;;  %v338_v1 = vld [vmem:[%s471_s1 + $0x1] sm:$0x1] (!%p140_p3) }
   0x7   : > { %143 = sbr.rel (%p140_p3) target bundleno = 30 (0x1e), region = 28  ;;  %v340_v2 = vld [vmem:[%s471_s1 + $0x2] sm:$0x1] (!%p140_p3)  ;;  %v342_v3 = vld [vmem:[%s471_s1 + $0x3] sm:$0x1] (!%p140_p3)  ;;  %v191_v4 = vunpack.c.l.bf16 (!%p140_p3), %v190_v0  ;;  %v197_v5 = vunpack.c.l.bf16 (!%p140_p3), %v338_v1 }
   0x8   : > { %v204_v6 = vunpack.c.l.bf16 (!%p140_p3), %v340_v2  ;;  %v211_v7 = vunpack.c.l.bf16 (!%p140_p3), %v342_v3  ;;  %v343_v15 = vld [vmem:[%s471_s1 + $0x1] sm:$0x1] (!%p140_p3)  ;;  %v345_v16 = vld [vmem:[%s471_s1 + $0x2] sm:$0x1] (!%p140_p3)  ;;  %v347_v17 = vld [vmem:[%s471_s1 + $0x3] sm:$0x1] (!%p140_p3) }
   0x9   : > { %v217_v21 = vunpack.c.l.bf16 (!%p140_p3), %v343_v15  ;;  %v222_v22 = vunpack.c.l.bf16 (!%p140_p3), %v345_v16  ;;  %v227_v23 = vunpack.c.l.bf16 (!%p140_p3), %v347_v17 }
   0xe   : > { %s478_s9 = smov (!%p170_p4, %s391_s9), 1 }
   0xf   : > { %s351_s21 = sshll.u32 %s478_s9, 3 }
  0x10   : > { %s177_s24 = scalar_lea.vmem %s470_s0, %s351_s21  ;;  %s188_s5 = scalar_lea.vmem %s472_s2, %s351_s21 }
  0x11   : > { %v189_v8 = vld [vmem:[%s177_s24] sm:$0x3]  ;;  %v337_v9 = vld [vmem:[%s177_s24 + $0x2] sm:$0x3]  ;;  %v339_v10 = vld [vmem:[%s177_s24 + $0x4] sm:$0x3] }
  0x12   : > { %v192_v11 = vmul.f32 %v191_v4, %v189_v8  ;;  %v198_v12 = vmul.f32 %v337_v9, %v197_v5  ;;  %v205_v13 = vmul.f32 %v339_v10, %v204_v6  ;;  %v341_v14 = vld [vmem:[%s177_s24 + $0x6] sm:$0x3] }
  0x13   : > { %v212_v19 = vmul.f32 %v341_v14, %v211_v7 }
  0x14   : > { %v199_v18 = vadd.f32 %v198_v12, %v192_v11 }
  0x16   : > { %v206_v20 = vadd.f32 %v205_v13, %v199_v18 }
  0x18   : > { %v213_v24 = vadd.f32 %v212_v19, %v206_v20 }
  0x1a   : > { %v214_v25 = vmul.f32 %v213_v24, %v191_v4  ;;  %v218_v26 = vmul.f32 %v217_v21, %v213_v24  ;;  %v223_v27 = vmul.f32 %v222_v22, %v213_v24  ;;  %v228_v28 = vmul.f32 %v227_v23, %v213_v24 }
  0x1c   : > { %215 = vst [vmem:[%s188_s5] sm:$0x3] %v214_v25  ;;  %344 = vst [vmem:[%s188_s5 + $0x2] sm:$0x3] %v218_v26 }
  0x1d   : > { %346 = vst [vmem:[%s188_s5 + $0x4] sm:$0x3] %v223_v27  ;;  %348 = vst [vmem:[%s188_s5 + $0x6] sm:$0x3] %v228_v28 }
  0x1e PF: > { %s12_s11 = sadd.s32 1, %s399_s11   ;;  %s473_s9 = smov %s395_s10 }
  0x1f   : > { %p9_p5 = scmp.ge.s32.totalorder %s12_s11, 4   ;;  %s474_s10 = smov %s476_s12 }
  0x21   :  { %11 = sbr.rel (!%p9_p5) target bundleno = 2 (0x2), region = 70 }

</bundles_post_ra>
